<compile_context>
chip_gen: v6e
topology: v6e:2x2x1
jax: 0.10.0
libtpu: 0.0.40
codegen_flags: <defaults>
</compile_context>

<pallas_src>
import functools

import jax
import jax.numpy as jnp
from jax import lax
from jax.experimental import pallas as pl
from jax.experimental.pallas import tpu as pltpu

ALPHA = 2.82 / 31
BETA = ALPHA / 159

# Lane-axis tile cap for the RHS kernel: in + out, double-buffered, 8-sublane
# padded (3, tile_n) f32 blocks -> 128 * tile_n bytes = 8 MiB at 64K lanes.
# Comfortably under the scoped-VMEM default on v5e / v6e / v7x.
MAX_TILE_N = 65536
# Sublane-row tile cap for the fused Euler kernel: (3, tile_rows, 128) f32
# blocks, 4 buffers -> 24 MiB at 2048 rows (= 256K columns per tile).
MAX_TILE_ROWS = 2048


def _round_up(x, m):
    return ((x + m - 1) // m) * m


# --------------------------- kernels ---------------------------

def _sir_rhs_kernel(y_ref, dy_ref, *, alpha, beta):
    # y_ref: (3, tile_n).  Only Python-float scalars are used as constants.
    y = y_ref[...]
    s = y[0:1, :]
    i = y[1:2, :]
    si = s * i
    dy_ref[0:1, :] = (-beta) * si
    dy_ref[1:2, :] = beta * si - alpha * i
    dy_ref[2:3, :] = alpha * i


def _sir_euler_kernel(y_ref, out_ref, *, alpha, beta, dt, n_steps, unroll):
    # Fold dt into the rates so the per-step body is pure lane-wise VPU work
    # with no cross-sublane movement and no redundant multiplies.
    a_dt = alpha * dt
    b_dt = beta * dt

    # Slice the three compartments ONCE before the loop; each is a
    # sublane-dense (tile_rows, 128) slab.
    s0 = y_ref[0]
    i0 = y_ref[1]
    r0 = y_ref[2]

    def step(_, carry):
        s, i, r = carry
        si_b = b_dt * (s * i)       # dt*beta*s*i
        rec = a_dt * i              # dt*alpha*i
        return s - si_b, i + si_b - rec, r + rec

    s, i, r = lax.fori_loop(0, n_steps, step, (s0, i0, r0), unroll=unroll)
    out_ref[0] = s
    out_ref[1] = i
    out_ref[2] = r


# --------------------------- wrappers ---------------------------

def sir_forward(t, y, alpha=ALPHA, beta=BETA):
    """Pallas implementation of SIR.forward(t, y); `t` is unused (as in torch)."""
    del t
    orig_shape = y.shape
    assert orig_shape[0] == 3, "leading dim of y must be 3 (S, I, R)"
    y2 = y.reshape(3, -1)
    n = y2.shape[1]

    if n <= MAX_TILE_N:
        # One block equal to the full array: legal for any n (block == full
        # dims) and avoids the extra pad/slice HBM traffic entirely.
        tile_n = n
        n_pad = n
        y_in = y2
    else:
        # Large 128-aligned lane tiles; at least two grid steps so both v7x
        # TensorCores get work under "parallel" semantics.
        half = -(-n // 2)
        tile_n = min(MAX_TILE_N, _round_up(half, 128))
        n_pad = _round_up(n, tile_n)
        y_in = jnp.pad(y2, ((0, 0), (0, n_pad - n))) if n_pad != n else y2

    grid = (n_pad // tile_n,)
    kernel = functools.partial(_sir_rhs_kernel, alpha=float(alpha), beta=float(beta))
    cost = pl.CostEstimate(
        flops=int(8 * n_pad),
        transcendentals=0,
        bytes_accessed=int(2 * 3 * n_pad * y_in.dtype.itemsize),
    )
    out = pl.pallas_call(
        kernel,
        out_shape=jax.ShapeDtypeStruct((3, n_pad), y_in.dtype),
        grid=grid,
        in_specs=[pl.BlockSpec((3, tile_n), lambda j: (0, j))],
        out_specs=pl.BlockSpec((3, tile_n), lambda j: (0, j)),
        compiler_params=pltpu.CompilerParams(dimension_semantics=("parallel",)),
        cost_estimate=cost,
    )(y_in)
    if n_pad != n:
        out = out[:, :n]
    return out.reshape(orig_shape)


def sir_integrate_euler(y0, dt, n_steps, alpha=ALPHA, beta=BETA):
    """Forward-Euler integration of the SIR RHS fused into one pallas_call
    (per-step pallas_calls at these sizes are pure launch overhead).
    Returns y(t0 + n_steps*dt) with the same shape as y0."""
    orig_shape = y0.shape
    assert orig_shape[0] == 3
    y2 = y0.reshape(3, -1)
    n = y2.shape[1]

    # Present each compartment as a sublane-dense (rows, 128) slab so the
    # compute-bound time loop uses full vregs. Zero-padded columns stay zero
    # through the Euler iteration (no division anywhere).
    n128 = _round_up(max(n, 1), 128)
    if n128 != n:
        y2 = jnp.pad(y2, ((0, 0), (0, n128 - n)))
    rows = n128 // 128

    if rows <= MAX_TILE_ROWS:
        tile_rows = rows            # block == full dims; any row count legal
    else:
        half = -(-rows // 2)
        tile_rows = min(MAX_TILE_ROWS, _round_up(half, 8))
        rows_pad = _round_up(rows, tile_rows)
        if rows_pad != rows:
            y2 = jnp.pad(y2.reshape(3, rows, 128),
                         ((0, 0), (0, rows_pad - rows), (0, 0))).reshape(3, -1)
            rows = rows_pad
    y3 = y2.reshape(3, rows, 128)
    grid = (rows // tile_rows,)

    n_steps = int(n_steps)
    unroll = max(1, min(n_steps, 8))
    kernel = functools.partial(
        _sir_euler_kernel,
        alpha=float(alpha), beta=float(beta), dt=float(dt),
        n_steps=n_steps, unroll=unroll,
    )
    cost = pl.CostEstimate(
        flops=int(6 * rows * 128 * n_steps),
        transcendentals=0,
        bytes_accessed=int(2 * 3 * rows * 128 * y3.dtype.itemsize),
    )
    out = pl.pallas_call(
        kernel,
        out_shape=jax.ShapeDtypeStruct((3, rows, 128), y3.dtype),
        grid=grid,
        in_specs=[pl.BlockSpec((3, tile_rows, 128), lambda j: (0, j, 0))],
        out_specs=pl.BlockSpec((3, tile_rows, 128), lambda j: (0, j, 0)),
        compiler_params=pltpu.CompilerParams(dimension_semantics=("parallel",)),
        cost_estimate=cost,
    )(y3)
    out2 = out.reshape(3, rows * 128)
    if rows * 128 != n:
        out2 = out2[:, :n]
    return out2.reshape(orig_shape)


# ----------------------- pure-JAX references -----------------------

def sir_reference(t, y, alpha=ALPHA, beta=BETA):
    del t
    s, i = y[0], y[1]
    ds = -beta * s * i
    di = beta * s * i - alpha * i
    dr = alpha * i
    return jnp.stack([ds, di, dr])


def euler_reference(y0, dt, n_steps, alpha=ALPHA, beta=BETA):
    def step(_, y):
        return y + dt * sir_reference(None, y, alpha, beta)
    return lax.fori_loop(0, int(n_steps), step, y0)


if __name__ == "__main__":
    key = jax.random.PRNGKey(0)
    k1, k2 = jax.random.split(key)

    t = jnp.float32(0.0)  # unused; mirrors the torch signature

    # Canonical single Eyam state y of shape (3,).
    y_single = jnp.array([254.0, 7.0, 0.0], dtype=jnp.float32)
    # Small batch of 8 SIR states: (3, 8).
    y_batch = jax.random.uniform(k1, (3, 8), dtype=jnp.float32, minval=0.0, maxval=261.0)
    # Medium batch: (3, 1500) -- still a single full-array block (no pad/slice).
    y_medium = jax.random.uniform(k2, (3, 1500), dtype=jnp.float32, minval=0.0, maxval=261.0)

    out_single = jax.block_until_ready(sir_forward(t, y_single))
    out_batch = jax.block_until_ready(sir_forward(t, y_batch))
    out_medium = jax.block_until_ready(sir_forward(t, y_medium))

    assert out_single.shape == y_single.shape and out_single.dtype == y_single.dtype
    assert out_batch.shape == y_batch.shape and out_batch.dtype == y_batch.dtype
    assert out_medium.shape == y_medium.shape and out_medium.dtype == y_medium.dtype
    assert jnp.allclose(out_single, sir_reference(t, y_single), rtol=1e-5, atol=1e-5)
    assert jnp.allclose(out_batch, sir_reference(t, y_batch), rtol=1e-5, atol=1e-5)
    assert jnp.allclose(out_medium, sir_reference(t, y_medium), rtol=1e-5, atol=1e-5)

    # Fused Euler time-stepping: one pallas_call for all 64 steps.
    dt, n_steps = 0.5, 64
    yT_single = jax.block_until_ready(sir_integrate_euler(y_single, dt, n_steps))
    yT_batch = jax.block_until_ready(sir_integrate_euler(y_batch, dt, n_steps))
    assert yT_single.shape == y_single.shape
    assert yT_batch.shape == y_batch.shape
    assert jnp.allclose(yT_single, euler_reference(y_single, dt, n_steps),
                        rtol=1e-4, atol=1e-3)
    assert jnp.allclose(yT_batch, euler_reference(y_batch, dt, n_steps),
                        rtol=1e-4, atol=1e-3)

    print("KERNEL_OK")
</pallas_src>

<mosaic_0001>
module attributes {stable_mosaic.version = 11 : i64} {
  func.func @_sir_rhs_kernel(%arg0: i32, %arg1: memref<3x1xf32, #tpu.memory_space<vmem>>, %arg2: memref<3x1xf32, #tpu.memory_space<vmem>>) attributes {dimension_semantics = [#tpu.dimension_semantics<parallel>], iteration_bounds = array<i64: 1>, scalar_prefetch = 0 : i64, scratch_operands = 0 : i64, tpu.core_type = #tpu.core_type<tc>, window_params = [{transform_indices = @transform_0, window_bounds = array<i64: 3, 1>}, {transform_indices = @transform_1, window_bounds = array<i64: 3, 1>}]} {
    %c0 = arith.constant 0 : index
    %c0_0 = arith.constant 0 : index
    %0 = vector.load %arg1[%c0, %c0_0] : memref<3x1xf32, #tpu.memory_space<vmem>>, vector<3x1xf32>
    %1 = vector.extract_strided_slice %0 {offsets = [0, 0], sizes = [1, 1], strides = [1, 1]} : vector<3x1xf32> to vector<1x1xf32>
    %2 = vector.extract_strided_slice %0 {offsets = [1, 0], sizes = [1, 1], strides = [1, 1]} : vector<3x1xf32> to vector<1x1xf32>
    %3 = arith.mulf %1, %2 : vector<1x1xf32>
    %cst = arith.constant -5.72124147E-4 : f32
    %4 = vector.broadcast %cst : f32 to vector<1x1xf32>
    %5 = arith.mulf %4, %3 : vector<1x1xf32>
    %c0_1 = arith.constant 0 : index
    %c0_2 = arith.constant 0 : index
    %6 = vector.load %arg2[%c0_1, %c0_2] : memref<3x1xf32, #tpu.memory_space<vmem>>, vector<1x1xf32>
    tpu.vector_store %arg2[%c0_1, %c0_2], %5 {strides = array<i32>} : memref<3x1xf32, #tpu.memory_space<vmem>>, vector<1x1xf32>,
    %cst_3 = arith.constant 5.72124147E-4 : f32
    %7 = vector.broadcast %cst_3 : f32 to vector<1x1xf32>
    %8 = arith.mulf %7, %3 : vector<1x1xf32>
    %cst_4 = arith.constant 0.0909677445 : f32
    %9 = vector.broadcast %cst_4 : f32 to vector<1x1xf32>
    %10 = arith.mulf %9, %2 : vector<1x1xf32>
    %11 = arith.subf %8, %10 : vector<1x1xf32>
    %c1 = arith.constant 1 : index
    %c0_5 = arith.constant 0 : index
    %12 = vector.load %arg2[%c1, %c0_5] : memref<3x1xf32, #tpu.memory_space<vmem>>, vector<1x1xf32>
    tpu.vector_store %arg2[%c1, %c0_5], %11 {strides = array<i32>} : memref<3x1xf32, #tpu.memory_space<vmem>>, vector<1x1xf32>,
    %cst_6 = arith.constant 0.0909677445 : f32
    %13 = vector.broadcast %cst_6 : f32 to vector<1x1xf32>
    %14 = arith.mulf %13, %2 : vector<1x1xf32>
    %c2 = arith.constant 2 : index
    %c0_7 = arith.constant 0 : index
    %15 = vector.load %arg2[%c2, %c0_7] : memref<3x1xf32, #tpu.memory_space<vmem>>, vector<1x1xf32>
    tpu.vector_store %arg2[%c2, %c0_7], %14 {strides = array<i32>} : memref<3x1xf32, #tpu.memory_space<vmem>>, vector<1x1xf32>,
    return
  }
  func.func @transform_0(%arg0: i32) -> (i32, i32) {
    %c0_i32 = arith.constant 0 : i32
    %c0_i32_0 = arith.constant 0 : i32
    return %c0_i32, %arg0 : i32, i32
  }
  func.func @transform_1(%arg0: i32) -> (i32, i32) {
    %c0_i32 = arith.constant 0 : i32
    %c0_i32_0 = arith.constant 0 : i32
    return %c0_i32, %arg0 : i32, i32
  }
}

</mosaic_0001>

<bundles_post_ra>
// kernel: tpu_custom_call.1
= control target key start
LH: loop header
LB: loop body
LE: loop exit
PB: predicated region body
PF: predicated region fallthrough
CT: control target
= control target key end

     0   :  { %vm23_vm0 = vcmask 1025   ;;  %vm14_vm1 = vcmask 0   ;;  %s51_s0 = inlined_call_operand.vmem [shape: f32[3,1], index: 0, kind: input, shape index: {}]   ;;  %s52_s1 = inlined_call_operand.vmem [shape: f32[3,1], index: 1, kind: output, shape index: {}]  }
   0x1   :  { %v8_v0 = vld [vmem:[%s51_s0] sm:$0x7] }
   0x2   :  { %v10_v1 = vrot.slane %v8_v0, 1  ;;  %v17_v2 = vmul.f32 0.090967745, %v8_v0 }
   0x4   :  { %v12_v3 = vmul.f32 %v10_v1, %v8_v0  ;;  %v19_v4 = vrot.slane %v17_v2, 1  ;;  %24 = vst.msk [vmem:[%s52_s1 + $0x1] sm:$0x2] %vm23_vm0, %v17_v2 }
   0x6   :  { %v13_v5 = vmul.f32 -0.00057212415, %v12_v3  ;;  %v16_v6 = vmul.f32 0.00057212415, %v12_v3 }
   0x8   :  { %15 = vst.msk [vmem:[%s52_s1] sm:$0x1] %vm14_vm1, %v13_v5  ;;  %v21_v7 = vsub.f32 %v16_v6, %v19_v4 }
   0xa   :  { %22 = vst.msk [vmem:[%s52_s1 + $0x1] sm:$0x1] %vm14_vm1, %v21_v7 }

</bundles_post_ra>
